<compile_context>
chip_gen: v5e
topology: v5e:2x2
jax: 0.10.0
libtpu: 0.0.40
codegen_flags: <defaults>
</compile_context>

<pallas_src>
import math

import jax
import jax.numpy as jnp
from jax.experimental import pallas as pl
from jax.experimental.pallas import tpu as pltpu

_OUT_DIM = 2       # (start, end) regression targets
_OUT_PAD = 128     # lane-dense padded output width
_LANE = 128
_SUBLANE = 8
_ROWS_TARGET = 512  # rows of work per grid step (amortizes ~0.35us step cost)


def _round_up(x, m):
    return ((x + m - 1) // m) * m


def _mlp_head_kernel(x_ref, w1_ref, b1_ref, w2_ref, b2_ref, w3_ref, b3_ref,
                     o_ref):
    """Fused Linear->ReLU->Linear->ReLU->Linear->Sigmoid on one row tile.

    One matmul chain per grid step: the (tile_b, tile_q, D) block is flattened
    to (tile_b*tile_q, D) rows so the MXU sees a single large-M matmul.
    """
    tb, tq, d = x_ref.shape
    rows = tb * tq
    x2d = x_ref[...].reshape(rows, d)

    # f32 math throughout (matches the PyTorch f32 head; the head is tiny so
    # f32 MXU passes are cheap next to the activation DMA).
    h = jnp.dot(x2d, w1_ref[...], preferred_element_type=jnp.float32)
    h = jnp.maximum(h + b1_ref[...], 0.0)
    h = jnp.dot(h, w2_ref[...], preferred_element_type=jnp.float32)
    h = jnp.maximum(h + b2_ref[...], 0.0)
    z = jnp.dot(h, w3_ref[...], preferred_element_type=jnp.float32)
    y = jax.nn.sigmoid(z + b3_ref[...])

    # Lane-dense (rows, 128) store; pad columns hold sigmoid(0)=0.5 and are
    # sliced off in the wrapper.
    # TODO(synk): for very large B*num_a_queries, pack the (rows, 2) result
    # lane-dense (64 tokens per 128-lane row) to cut output HBM traffic ~64x.
    o_ref[...] = y.reshape(tb, tq, _OUT_PAD).astype(o_ref.dtype)


def _audio_reg_head_pallas(x, w1, b1, w2, b2, w3, b3, num_a_queries):
    """x: [B, S, D] -> MLP head on the last `num_a_queries` tokens.

    Returns [B * num_a_queries, 2] float32.
    """
    B, S, D = x.shape
    H = w1.shape[1]
    Hp = _round_up(H, _LANE)
    q = num_a_queries
    assert 0 < q <= S
    q_start = S - q

    # ---- query tiling --------------------------------------------------
    # tile_q must be a multiple of 8 (sublane rule). If it also divides
    # q_start, the x[:, -q:] window folds straight into the BlockSpec
    # index_map (no wrapper-side slice / extra HBM pass).
    cap = min(_ROWS_TARGET, _round_up(q, _SUBLANE))
    tile_q = None
    for t in range(cap, 0, -_SUBLANE):
        if q_start % t == 0:
            tile_q = t
            break
    if tile_q is not None:
        x_src, eff_start = x, q_start
    else:
        tile_q = cap
        x_src, eff_start = x[:, q_start:, :], 0  # rare fallback: one extra copy
    qt = pl.cdiv(q, tile_q)

    # ---- batch tiling ---------------------------------------------------
    # Target ~512 rows of work per grid step.
    tile_b = max(1, min(_ROWS_TARGET // tile_q, B))
    bt = pl.cdiv(B, tile_b)

    # v7x megacore: guarantee >=2 parallel grid steps when the problem can be
    # split (only one extra ~0.35us step on the single-TC v5e/v6e).
    if bt * qt < 2:
        if tile_b > 1:
            tile_b = pl.cdiv(B, 2)
            bt = pl.cdiv(B, tile_b)
        elif tile_q > _SUBLANE:
            for t in range(_round_up(tile_q // 2, _SUBLANE), 0, -_SUBLANE):
                if t < tile_q and eff_start % t == 0:
                    tile_q = t
                    break
            qt = pl.cdiv(q, tile_q)
    qs_blk = eff_start // tile_q

    b_pad = bt * tile_b
    q_pad = qt * tile_q
    rows_pad = b_pad * q_pad

    # ---- parameters: f32, hidden width padded to a 128 multiple ----------
    # Zero padding is exact through ReLU (padded activations are relu(0)=0 and
    # hit zero rows of the next weight matrix).
    w1p = jnp.pad(w1, ((0, 0), (0, Hp - H))).astype(jnp.float32)
    w2p = jnp.pad(w2, ((0, Hp - H), (0, Hp - H))).astype(jnp.float32)
    w3p = jnp.pad(w3, ((0, Hp - H), (0, _OUT_PAD - _OUT_DIM))).astype(jnp.float32)
    b1p = jnp.pad(b1.reshape(1, H), ((0, 0), (0, Hp - H))).astype(jnp.float32)
    b2p = jnp.pad(b2.reshape(1, H), ((0, 0), (0, Hp - H))).astype(jnp.float32)
    b3p = jnp.pad(b3.reshape(1, _OUT_DIM),
                  ((0, 0), (0, _OUT_PAD - _OUT_DIM))).astype(jnp.float32)

    weight_elems = D * Hp + Hp * Hp + Hp * _OUT_PAD + 2 * Hp + _OUT_PAD
    weight_bytes = 4 * weight_elems

    # Cost estimate consistent with the padded work actually executed.
    cost = pl.CostEstimate(
        flops=2 * rows_pad * (D * Hp + Hp * Hp + Hp * _OUT_PAD),
        transcendentals=rows_pad * _OUT_PAD,
        bytes_accessed=(rows_pad * D * x_src.dtype.itemsize
                        + weight_bytes
                        + 4 * rows_pad * _OUT_PAD),
    )

    # VMEM: 2x double-buffered activation/output tiles + 1x weights + headroom.
    step_bytes = tile_b * tile_q * (D * x_src.dtype.itemsize + _OUT_PAD * 4)
    vmem_limit = int(min(64 * 1024 * 1024,
                         2 * step_bytes + weight_bytes + 4 * 1024 * 1024))

    # Whole-array VMEM residency for weights/biases: DMA'd once before the
    # grid, single-buffered (what the review asked pl.Buffered(1) for).
    weight_specs = [pl.BlockSpec(memory_space=pltpu.MemorySpace.VMEM)
                    for _ in range(6)]

    out = pl.pallas_call(
        _mlp_head_kernel,
        out_shape=jax.ShapeDtypeStruct((b_pad, q_pad, _OUT_PAD), jnp.float32),
        grid_spec=pltpu.PrefetchScalarGridSpec(
            num_scalar_prefetch=0,
            grid=(bt, qt),
            in_specs=[
                # Activations: query-window offset baked into the block index.
                pl.BlockSpec((tile_b, tile_q, D),
                             lambda bi, qi: (bi, qs_blk + qi, 0)),
                *weight_specs,   # w1, b1, w2, b2, w3, b3
            ],
            out_specs=pl.BlockSpec((tile_b, tile_q, _OUT_PAD),
                                   lambda bi, qi: (bi, qi, 0)),
        ),
        compiler_params=pltpu.CompilerParams(
            dimension_semantics=("parallel", "parallel"),
            vmem_limit_bytes=vmem_limit),
        cost_estimate=cost,
    )(x_src, w1p, b1p, w2p, b2p, w3p, b3p)

    # Drop padded batch rows, padded query rows and padded output lanes, then
    # flatten (B, q) -> B*q exactly like torch.flatten(start_dim=0, end_dim=1).
    return out[:B, :q, :_OUT_DIM].reshape(B * q, _OUT_DIM)


def _init_linear_params(key, in_features, out_features):
    """PyTorch nn.Linear default init: weight & bias ~ U(-1/sqrt(fan_in), +).

    Weight is returned as [in_features, out_features] (transposed w.r.t.
    nn.Linear's [out, in]) so the kernel computes x @ W + b.
    """
    kw, kb = jax.random.split(key)
    bound = 1.0 / math.sqrt(in_features)
    w = jax.random.uniform(kw, (in_features, out_features), jnp.float32,
                           minval=-bound, maxval=bound)
    b = jax.random.uniform(kb, (out_features,), jnp.float32,
                           minval=-bound, maxval=bound)
    return w, b


class AudioRegHeadPallas:
    """JAX/Pallas port of AudioRegHead."""

    def __init__(self, d_model, key):
        k1, k2, k3 = jax.random.split(key, 3)
        h = d_model // 2
        self.w1, self.b1 = _init_linear_params(k1, d_model, h)
        self.w2, self.b2 = _init_linear_params(k2, h, h)
        self.w3, self.b3 = _init_linear_params(k3, h, _OUT_DIM)
        self.d_model = d_model

    def __call__(self, x, num_v_queries, num_a_queries):
        del num_v_queries  # unused, kept for API parity with the PyTorch module
        assert x.shape[-1] == self.d_model
        preds = _audio_reg_head_pallas(x, self.w1, self.b1, self.w2, self.b2,
                                       self.w3, self.b3, num_a_queries)
        return (None, preds)


def _reference_forward(head, x, num_a_queries):
    """Pure-JAX f32 reference matching the PyTorch module."""
    hp = jax.lax.Precision.HIGHEST
    xa = x[:, -num_a_queries:].astype(jnp.float32)
    b, qn, d = xa.shape
    x2d = xa.reshape(b * qn, d)
    h = jnp.maximum(jnp.dot(x2d, head.w1, precision=hp) + head.b1, 0.0)
    h = jnp.maximum(jnp.dot(h, head.w2, precision=hp) + head.b2, 0.0)
    return jax.nn.sigmoid(jnp.dot(h, head.w3, precision=hp) + head.b3)


if __name__ == "__main__":
    key = jax.random.PRNGKey(0)
    k_param, k_x = jax.random.split(key)

    batch = 2
    seq = 16
    d_model = 128
    num_v_queries = 8
    num_a_queries = 8

    head = AudioRegHeadPallas(d_model, k_param)
    x = jax.random.normal(k_x, (batch, seq, d_model), jnp.float32)

    _, a_action_preds = head(x, num_v_queries, num_a_queries)
    a_action_preds = jax.block_until_ready(a_action_preds)

    assert a_action_preds.shape == (batch * num_a_queries, _OUT_DIM), \
        a_action_preds.shape

    ref = _reference_forward(head, x, num_a_queries)
    max_err = float(jnp.max(jnp.abs(a_action_preds - ref)))
    # f32 kernel math vs. f32 reference; tolerance covers MXU f32 pass modes.
    assert max_err < 1e-2, max_err

    print("KERNEL_OK")
</pallas_src>

<mosaic_0001>
module attributes {stable_mosaic.version = 11 : i64} {
  func.func @_mlp_head_kernel(%arg0: i32, %arg1: i32, %arg2: memref<1x8x128xf32, #tpu.memory_space<vmem>>, %arg3: memref<128x128xf32, #tpu.memory_space<vmem>>, %arg4: memref<1x128xf32, #tpu.memory_space<vmem>>, %arg5: memref<128x128xf32, #tpu.memory_space<vmem>>, %arg6: memref<1x128xf32, #tpu.memory_space<vmem>>, %arg7: memref<128x128xf32, #tpu.memory_space<vmem>>, %arg8: memref<1x128xf32, #tpu.memory_space<vmem>>, %arg9: memref<1x8x128xf32, #tpu.memory_space<vmem>>) attributes {dimension_semantics = [#tpu.dimension_semantics<parallel>, #tpu.dimension_semantics<parallel>], iteration_bounds = array<i64: 2, 1>, scalar_prefetch = 0 : i64, scratch_operands = 0 : i64, tpu.core_type = #tpu.core_type<tc>, window_params = [{transform_indices = @transform_0, window_bounds = array<i64: 1, 8, 128>}, {pipeline_mode = #tpu.pipeline_mode<synchronous>, transform_indices = @transform_1, window_bounds = array<i64: 128, 128>}, {pipeline_mode = #tpu.pipeline_mode<synchronous>, transform_indices = @transform_2, window_bounds = array<i64: 1, 128>}, {pipeline_mode = #tpu.pipeline_mode<synchronous>, transform_indices = @transform_3, window_bounds = array<i64: 128, 128>}, {pipeline_mode = #tpu.pipeline_mode<synchronous>, transform_indices = @transform_4, window_bounds = array<i64: 1, 128>}, {pipeline_mode = #tpu.pipeline_mode<synchronous>, transform_indices = @transform_5, window_bounds = array<i64: 128, 128>}, {pipeline_mode = #tpu.pipeline_mode<synchronous>, transform_indices = @transform_6, window_bounds = array<i64: 1, 128>}, {transform_indices = @transform_7, window_bounds = array<i64: 1, 8, 128>}]} {
    %c0 = arith.constant 0 : index
    %c0_0 = arith.constant 0 : index
    %c0_1 = arith.constant 0 : index
    %0 = vector.load %arg2[%c0, %c0_0, %c0_1] : memref<1x8x128xf32, #tpu.memory_space<vmem>>, vector<1x8x128xf32>
    %1 = vector.shape_cast %0 : vector<1x8x128xf32> to vector<8x128xf32>
    %c0_2 = arith.constant 0 : index
    %c0_3 = arith.constant 0 : index
    %2 = vector.load %arg3[%c0_2, %c0_3] : memref<128x128xf32, #tpu.memory_space<vmem>>, vector<128x128xf32>
    %cst = arith.constant dense<0.000000e+00> : vector<8x128xf32>
    %3 = tpu.matmul %1, %2, %cst {dimension_numbers = #tpu.dot_dimension_numbers<[1], [0], [0], [1], [0, 0, 1, 1], [], []>} : vector<8x128xf32>, vector<128x128xf32>, vector<8x128xf32> -> vector<8x128xf32>
    %c0_4 = arith.constant 0 : index
    %c0_5 = arith.constant 0 : index
    %4 = vector.load %arg4[%c0_4, %c0_5] : memref<1x128xf32, #tpu.memory_space<vmem>>, vector<1x128xf32>
    %5 = vector.broadcast %4 : vector<1x128xf32> to vector<8x128xf32>
    %6 = arith.addf %3, %5 : vector<8x128xf32>
    %cst_6 = arith.constant 0.000000e+00 : f32
    %7 = vector.broadcast %cst_6 : f32 to vector<8x128xf32>
    %8 = arith.maximumf %6, %7 : vector<8x128xf32>
    %c0_7 = arith.constant 0 : index
    %c0_8 = arith.constant 0 : index
    %9 = vector.load %arg5[%c0_7, %c0_8] : memref<128x128xf32, #tpu.memory_space<vmem>>, vector<128x128xf32>
    %cst_9 = arith.constant dense<0.000000e+00> : vector<8x128xf32>
    %10 = tpu.matmul %8, %9, %cst_9 {dimension_numbers = #tpu.dot_dimension_numbers<[1], [0], [0], [1], [0, 0, 1, 1], [], []>} : vector<8x128xf32>, vector<128x128xf32>, vector<8x128xf32> -> vector<8x128xf32>
    %c0_10 = arith.constant 0 : index
    %c0_11 = arith.constant 0 : index
    %11 = vector.load %arg6[%c0_10, %c0_11] : memref<1x128xf32, #tpu.memory_space<vmem>>, vector<1x128xf32>
    %12 = vector.broadcast %11 : vector<1x128xf32> to vector<8x128xf32>
    %13 = arith.addf %10, %12 : vector<8x128xf32>
    %cst_12 = arith.constant 0.000000e+00 : f32
    %14 = vector.broadcast %cst_12 : f32 to vector<8x128xf32>
    %15 = arith.maximumf %13, %14 : vector<8x128xf32>
    %c0_13 = arith.constant 0 : index
    %c0_14 = arith.constant 0 : index
    %16 = vector.load %arg7[%c0_13, %c0_14] : memref<128x128xf32, #tpu.memory_space<vmem>>, vector<128x128xf32>
    %cst_15 = arith.constant dense<0.000000e+00> : vector<8x128xf32>
    %17 = tpu.matmul %15, %16, %cst_15 {dimension_numbers = #tpu.dot_dimension_numbers<[1], [0], [0], [1], [0, 0, 1, 1], [], []>} : vector<8x128xf32>, vector<128x128xf32>, vector<8x128xf32> -> vector<8x128xf32>
    %c0_16 = arith.constant 0 : index
    %c0_17 = arith.constant 0 : index
    %18 = vector.load %arg8[%c0_16, %c0_17] : memref<1x128xf32, #tpu.memory_space<vmem>>, vector<1x128xf32>
    %19 = vector.broadcast %18 : vector<1x128xf32> to vector<8x128xf32>
    %20 = arith.addf %17, %19 : vector<8x128xf32>
    %21 = arith.negf %20 : vector<8x128xf32>
    %22 = math.exp %21 : vector<8x128xf32>
    %cst_18 = arith.constant 1.000000e+00 : f32
    %23 = vector.broadcast %cst_18 : f32 to vector<8x128xf32>
    %24 = arith.addf %23, %22 : vector<8x128xf32>
    %25 = arith.divf %23, %24 : vector<8x128xf32>
    %26 = vector.shape_cast %25 : vector<8x128xf32> to vector<1x8x128xf32>
    %c0_19 = arith.constant 0 : index
    %c0_20 = arith.constant 0 : index
    %c0_21 = arith.constant 0 : index
    %27 = vector.load %arg9[%c0_19, %c0_20, %c0_21] : memref<1x8x128xf32, #tpu.memory_space<vmem>>, vector<1x8x128xf32>
    tpu.vector_store %arg9[%c0_19, %c0_20, %c0_21], %26 {strides = array<i32>} : memref<1x8x128xf32, #tpu.memory_space<vmem>>, vector<1x8x128xf32>,
    return
  }
  func.func @transform_0(%arg0: i32, %arg1: i32) -> (i32, i32, i32) {
    %c1_i32 = arith.constant 1 : i32
    %0 = arith.addi %c1_i32, %arg1 : i32
    %c0_i32 = arith.constant 0 : i32
    %c0_i32_0 = arith.constant 0 : i32
    return %arg0, %0, %c0_i32 : i32, i32, i32
  }
  func.func @transform_1(%arg0: i32, %arg1: i32) -> (i32, i32) {
    %c0_i32 = arith.constant 0 : i32
    %c0_i32_0 = arith.constant 0 : i32
    %c0_i32_1 = arith.constant 0 : i32
    return %c0_i32, %c0_i32_0 : i32, i32
  }
  func.func @transform_2(%arg0: i32, %arg1: i32) -> (i32, i32) {
    %c0_i32 = arith.constant 0 : i32
    %c0_i32_0 = arith.constant 0 : i32
    %c0_i32_1 = arith.constant 0 : i32
    return %c0_i32, %c0_i32_0 : i32, i32
  }
  func.func @transform_3(%arg0: i32, %arg1: i32) -> (i32, i32) {
    %c0_i32 = arith.constant 0 : i32
    %c0_i32_0 = arith.constant 0 : i32
    %c0_i32_1 = arith.constant 0 : i32
    return %c0_i32, %c0_i32_0 : i32, i32
  }
  func.func @transform_4(%arg0: i32, %arg1: i32) -> (i32, i32) {
    %c0_i32 = arith.constant 0 : i32
    %c0_i32_0 = arith.constant 0 : i32
    %c0_i32_1 = arith.constant 0 : i32
    return %c0_i32, %c0_i32_0 : i32, i32
  }
  func.func @transform_5(%arg0: i32, %arg1: i32) -> (i32, i32) {
    %c0_i32 = arith.constant 0 : i32
    %c0_i32_0 = arith.constant 0 : i32
    %c0_i32_1 = arith.constant 0 : i32
    return %c0_i32, %c0_i32_0 : i32, i32
  }
  func.func @transform_6(%arg0: i32, %arg1: i32) -> (i32, i32) {
    %c0_i32 = arith.constant 0 : i32
    %c0_i32_0 = arith.constant 0 : i32
    %c0_i32_1 = arith.constant 0 : i32
    return %c0_i32, %c0_i32_0 : i32, i32
  }
  func.func @transform_7(%arg0: i32, %arg1: i32) -> (i32, i32, i32) {
    %c0_i32 = arith.constant 0 : i32
    %c0_i32_0 = arith.constant 0 : i32
    return %arg0, %arg1, %c0_i32 : i32, i32, i32
  }
}

</mosaic_0001>

<bundles_post_ra>
// kernel: tpu_custom_call.1
= control target key start
LH: loop header
LB: loop body
LE: loop exit
PB: predicated region body
PF: predicated region fallthrough
CT: control target
= control target key end

     0   :  { %s1203_s0 = inlined_call_operand.hbm [shape: f32[2,16,128], index: 0, kind: input, shape index: {}]   ;;  %s1204_s1 = inlined_call_operand.hbm [shape: f32[128,128], index: 1, kind: input, shape index: {}]   ;;  %s1205_s2 = inlined_call_operand.vmem [shape: f32[1,128], index: 2, kind: input, shape index: {}]   ;;  %s1206_s3 = inlined_call_operand.hbm [shape: f32[128,128], index: 3, kind: input, shape index: {}]   ;;  %s1207_s4 = inlined_call_operand.vmem [shape: f32[1,128], index: 4, kind: input, shape index: {}]   ;;  %s1208_s5 = inlined_call_operand.hbm [shape: f32[128,128], index: 5, kind: input, shape index: {}]   ;;  %s1209_s6 = inlined_call_operand.vmem [shape: f32[1,128], index: 6, kind: input, shape index: {}]   ;;  %s1210_s7 = inlined_call_operand.hbm [shape: f32[2,8,128], index: 7, kind: output, shape index: {}]  }
   0x1   :  { %1211 = sst [smem:[#allocation15_spill]] %s1204_s1 }
   0x2   :  { %1212 = sst [smem:[#allocation16_spill]] %s1206_s3 }
   0x3   :  { %1213 = sst [smem:[#allocation17_spill]] %s1208_s5 }
   0x4   :  { %12 = vsyncpa [#allocation3], 0 }
   0x5   :  { %14 = vsyncpa [#allocation3 + $0x1], 0 }
   0x6   :  { %15 = vsyncpa [#allocation6], 0 }
   0x7   :  { %16 = vsyncpa [#allocation9], 0 }
   0x8   :  { %17 = vsyncpa [#allocation4], 0 }
   0x9   :  { %19 = vsyncpa [#allocation4 + $0x1], 0  ;;  %s1020_s24 = smov 0   ;;  %s1022_s25 = smov 0  }
   0xa   :  { %s1024_s26 = smov 0   ;;  %s1026_s27 = smov 0  }
   0xb   :  { %s1028_s28 = smov 0   ;;  %s1030_s29 = smov 0  }
   0xc LB: > { %s639_s30 = sadd.s32 4294967295, %s973_s29   ;;  %p641_p0 = scmp.ge.s32.totalorder %s973_s29, 1  ;;  %s973_s29 = sphi %s1030_s29, %s25_s29   ;;  %s969_s28 = sphi %s1028_s28, %s1228_s28   ;;  %s965_s27 = sphi %s1026_s27, %s1227_s27   ;;  %s961_s26 = sphi %s1024_s26, %s1226_s26   ;;  %s957_s25 = sphi %s1022_s25, %s1225_s25   ;;  %s953_s24 = sphi %s1020_s24, %s1224_s24  }
   0xd   : > { %p1054_p1 = scmp.eq.s32.totalorder %s639_s30, 0  ;;  %p226_p2 = scmp.lt.s32.totalorder %s973_s29, 3 }
   0xe   : > { %s1215_s1 = sld [smem:[#allocation15_spill]]  ;;  %s975_s13 = smov [#allocation5]  }
   0xf   : > { %p1062_p3 = pnand %p641_p0, %p226_p2  ;;  %s239_s14 = sshll.u32 %s975_s13, 4  ;;  %s240_s14 = int_to_ptr.vmem [resolvable:$true] %s239_s14 }
  0x10   : > { %p645_p6 = scmp.ge.s32.totalorder %s973_s29, 2  ;;  %s1218_s3 = sld [smem:[#allocation16_spill]] }
  0x11   : > { %p677_p4 = pneg %p1062_p3  ;;  %s976_s19 = smov 128  }
  0x12   : > { %s977_s20 = smov 8   ;;  %s978_s21 = smov [#allocation7]  }
  0x13   : > { %p1070_p5 = pnand %p677_p4, %p1054_p1  ;;  %s256_s22 = sshll.u32 %s978_s21, 4  ;;  %s257_s22 = int_to_ptr.vmem [resolvable:$true] %s256_s22 }
  0x14   : > { %s237_s11 = sshll.u32 %s1215_s1, 4  ;;  %s1219_s5 = sld [smem:[#allocation17_spill]]  ;;  %s238_s11 = int_to_ptr.hbm [resolvable:$true] %s237_s11 }
  0x15   : > { %680 = dma.hbm_to_vmem [thread:$0]  (!%p1070_p5), %s238_s11, 2048, %s240_s14, [#allocation6], %s976_s19, %s976_s19, %s977_s20  }
  0x16   : > { %s254_s18 = sshll.u32 %s1218_s3, 4  ;;  %s979_s13 = smov [#allocation8]   ;;  %s255_s18 = int_to_ptr.hbm [resolvable:$true] %s254_s18 }
  0x17   : > { %683 = dma.hbm_to_vmem [thread:$0]  (!%p1070_p5), %s255_s18, 2048, %s257_s22, [#allocation6], %s976_s19, %s976_s19, %s977_s20  }
  0x18   : > { %s273_s16 = sshll.u32 %s979_s13, 4  ;;  %s640_s11 = sadd.s32 4294967294, %s973_s29   ;;  %s274_s16 = int_to_ptr.vmem [resolvable:$true] %s273_s16 }
  0x19   : > { %s37_s14 = sadd.s32 1, %s969_s28  ;;  %s48_s17 = sadd.s32 1, %s961_s26 }
  0x1a   : > { %s271_s10 = sshll.u32 %s1219_s5, 4  ;;  %p39_p7 = scmp.ge.s32.totalorder %s37_s14, 2  ;;  %s272_s10 = int_to_ptr.hbm [resolvable:$true] %s271_s10 }
  0x1b   : > { %686 = dma.hbm_to_vmem [thread:$0]  (!%p1070_p5), %s272_s10, 2048, %s274_s16, [#allocation9], %s976_s19, %s976_s19, %s977_s20  }
  0x1c   : > { %p55_p8 = scmp.ne.s32.totalorder %s961_s26, %s957_s25  ;;  %p56_p9 = scmp.eq.s32.totalorder %s973_s29, 0 }
  0x1d   : > { %p61_p10 = scmp.ne.s32.totalorder %s957_s25, %s953_s24  ;;  %s1230_s14 = smov (%p39_p7, %s37_s14), 0 }
  0x1e   : > { %p1097_p11 = por %p56_p9, %p55_p8  ;;  %s43_s19 = ssub.s32 %s969_s28, %s1230_s14 }
  0x1f   : > { %p1103_p12 = por %p1054_p1, %p61_p10  ;;  %p213_p13 = scmp.eq.s32.totalorder %s639_s30, 1 }
  0x20   : > { %p46_p0 = scmp.eq.s32.totalorder %s43_s19, 0  ;;  %p219_p2 = scmp.eq.s32.totalorder %s640_s11, 1 }
  0x21   : > { %p1111_p4 = por %p213_p13, %p55_p8  ;;  %p698_p5 = scmp.lt.s32.totalorder %s973_s29, 2 }
  0x22   : > { %s1117_s21 = scalar_select %p46_p0, %s961_s26, %s48_s17  }
  0x23   : > { %p1119_p7 = por %p219_p2, %p61_p10  ;;  %s290_s23 = sand.u32 1, %s961_s26  }
  0x24   : > { %s646_s9 = sshll.u32 %s290_s23, 3  ;;  %s660_s10 = sshll.u32 %s969_s28, 4 }
  0x25   : > { %s560_s30 = scalar_lea.hbm %s1203_s0, %s660_s10  ;;  %s294_s19 = scalar_lea.vmem [#allocation2], %s646_s9 }
  0x26   : > { %s305_s11 = sshll.u32 %s294_s19, 4  ;;  %s561_s1 = scalar_lea.hbm %s560_s30, 8  ;;  %s306_s11 = int_to_ptr.vmem [resolvable:$true] %s305_s11 }
  0x27   : > { %s303_s3 = sshll.u32 %s561_s1, 4  ;;  %p688_p8 = pnand %p698_p5, %p1097_p11  ;;  %s304_s3 = int_to_ptr.hbm [resolvable:$true] %s303_s3 }
  0x28   : > { %s291_s17 = scalar_lea.sflag [#allocation3], %s290_s23  ;;  %314 = sbr.rel (%p1062_p3) target bundleno = 507 (0x1fb), region = 48 }
  0x29   : > { %690 = dma.hbm_to_vmem [thread:$0]  (!%p688_p8), %s304_s3, 128, %s306_s11, %s291_s17  }
  0x2a   : > { %s1133_s5 = sand.u32 (!%p1062_p3), 1, %s957_s25  }
  0x2b   : > { %s650_s9 = sshll.u32 (!%p1062_p3), %s1133_s5, 3  ;;  %s317_s10 = scalar_lea.sflag (!%p1062_p3), [#allocation3], %s1133_s5 }
  0x2c   : > { %s1139_s13 = scalar_lea.vmem (!%p1062_p3), [#allocation2], %s650_s9 }
  0x2d   : > { %936 = dma.done.wait (%p1103_p12), %s317_s10, 128  }
  0x2e   : > { %938 = vsyncadd (%p1103_p12), %s317_s10, 4294967168 }
  0x2f   : > { %940 = dma.done.wait (%p1054_p1), [#allocation6], 4096  }
  0x30   : > { %942 = vsyncadd (%p1054_p1), [#allocation6], 4294963200 }
  0x31   : > { %944 = dma.done.wait (%p1054_p1), [#allocation9], 2048  }
  0x32   : > { %946 = vsyncadd (%p1054_p1), [#allocation9], 4294965248  ;;  %v384_v0 = vld [vmem:[#allocation5 + $0x78] sm:$0xff]  ;;  %v383_v1 = vld [vmem:[#allocation5 + $0x70] sm:$0xff]  ;;  %s657_s23 = sshll.u32 %s965_s27, 3  ;;  %s366_s11 = scalar_lea.vmem [#allocation10], %s650_s9 }
  0x33   : > { %389 = vmatpush.msra.mxu0 %v384_v0  ;;  %v382_v2 = vld [vmem:[#allocation5 + $0x68] sm:$0xff]  ;;  %v381_v3 = vld [vmem:[#allocation5 + $0x60] sm:$0xff]  ;;  %v425_v4 = vld [vmem:[#allocation7 + $0x78] sm:$0xff]  ;;  %s523_s19 = scalar_lea.hbm %s1210_s7, %s657_s23  ;;  %s525_s17 = sshll.u32 %s366_s11, 4  ;;  %s526_s17 = int_to_ptr.vmem [resolvable:$true] %s525_s17 }
  0x34   : > { %v380_v5 = vld [vmem:[#allocation5 + $0x58] sm:$0xff]  ;;  %430 = vmatpush.msra.mxu1 %v425_v4  ;;  %v424_v6 = vld [vmem:[#allocation7 + $0x70] sm:$0xff]  ;;  %v423_v7 = vld [vmem:[#allocation7 + $0x68] sm:$0xff]  ;;  %s527_s10 = sshll.u32 %s523_s19, 4  ;;  %s512_s27 = scalar_lea.sflag [#allocation4], %s1133_s5  ;;  %s528_s10 = int_to_ptr.hbm [resolvable:$true] %s527_s10 }
  0x35   : > { %390 = vmatpush.msra.mxu0 %v383_v1  ;;  %v379_v8 = vld [vmem:[#allocation5 + $0x50] sm:$0xff]  ;;  %v422_v9 = vld [vmem:[#allocation7 + $0x60] sm:$0xff]  ;;  %v378_v10 = vld [vmem:[#allocation5 + $0x48] sm:$0xff]  ;;  %s903_s8 = scalar_lea.hbm %s1210_s7, 16 }
  0x36   : > { %431 = vmatpush.msra.mxu1 %v424_v6  ;;  %v421_v11 = vld [vmem:[#allocation7 + $0x58] sm:$0xff]  ;;  %v377_v12 = vld [vmem:[#allocation5 + $0x40] sm:$0xff]  ;;  %v420_v13 = vld [vmem:[#allocation7 + $0x50] sm:$0xff] }
  0x37   : > { %391 = vmatpush.msra.mxu0 %v382_v2  ;;  %v376_v14 = vld [vmem:[#allocation5 + $0x38] sm:$0xff]  ;;  %v419_v15 = vld [vmem:[#allocation7 + $0x48] sm:$0xff]  ;;  %v375_v16 = vld [vmem:[#allocation5 + $0x30] sm:$0xff] }
  0x38   : > { %432 = vmatpush.msra.mxu1 %v423_v7  ;;  %v418_v17 = vld [vmem:[#allocation7 + $0x40] sm:$0xff]  ;;  %v374_v18 = vld [vmem:[#allocation5 + $0x28] sm:$0xff]  ;;  %v417_v19 = vld [vmem:[#allocation7 + $0x38] sm:$0xff] }
  0x39   : > { %392 = vmatpush.msra.mxu0 %v381_v3  ;;  %v373_v20 = vld [vmem:[#allocation5 + $0x20] sm:$0xff]  ;;  %v416_v21 = vld [vmem:[#allocation7 + $0x30] sm:$0xff]  ;;  %v372_v22 = vld [vmem:[#allocation5 + $0x18] sm:$0xff] }
  0x3a   : > { %433 = vmatpush.msra.mxu1 %v422_v9  ;;  %v415_v23 = vld [vmem:[#allocation7 + $0x28] sm:$0xff]  ;;  %v371_v24 = vld [vmem:[#allocation5 + $0x10] sm:$0xff]  ;;  %v414_v25 = vld [vmem:[#allocation7 + $0x20] sm:$0xff] }
  0x3b   : > { %393 = vmatpush.msra.mxu0 %v380_v5  ;;  %v370_v26 = vld [vmem:[#allocation5 + $0x8] sm:$0xff]  ;;  %v413_v27 = vld [vmem:[#allocation7 + $0x18] sm:$0xff]  ;;  %v369_v28 = vld [vmem:[#allocation5] sm:$0xff] }
  0x3c   : > { %434 = vmatpush.msra.mxu1 %v421_v11  ;;  %v368_v29 = vld [vmem:[%s1139_s13] sm:$0xff]  ;;  %v411_v31 = vld [vmem:[#allocation7 + $0x8] sm:$0xff]  ;;  %v410_v32 = vld [vmem:[#allocation7] sm:$0xff]  ;;  %s897_s13 = sshra.s32 %s528_s10, 4  ;;  %s898_s13 = int_to_ptr.hbm [resolvable:$true] %s897_s13 }
  0x3d   : > { %394 = vmatpush.msra.mxu0 %v379_v8  ;;  %v412_v30 = vld [vmem:[#allocation7 + $0x10] sm:$0xff]  ;;  %v466_v33 = vld [vmem:[#allocation8 + $0x78] sm:$0xff]  ;;  %v464_v35 = vld [vmem:[#allocation8 + $0x68] sm:$0xff]  ;;  %s899_s1 = scalar_lea.hbm %s898_s13, 8  ;;  %p904_p10 = scmp.lt.s32.totalorder %s898_s13, %s1210_s7 }
  0x3e   : > { %435 = vmatpush.msra.mxu1 %v420_v13  ;;  %v465_v34 = vld [vmem:[#allocation8 + $0x70] sm:$0xff]  ;;  %471 = vmatpush.msra.mxu2 %v466_v33  ;;  %v463_v36 = vld [vmem:[#allocation8 + $0x60] sm:$0xff]  ;;  %v462_v37 = vld [vmem:[#allocation8 + $0x58] sm:$0xff]  ;;  %p900_p1 = scmp.ne.s32.totalorder %s898_s13, %s899_s1  ;;  %p905_p11 = scmp.lt.s32.totalorder %s903_s8, %s899_s1 }
  0x3f   : > { %395 = vmatpush.msra.mxu0 %v378_v10  ;;  %v461_v38 = vld [vmem:[#allocation8 + $0x50] sm:$0xff]  ;;  %v460_v39 = vld [vmem:[#allocation8 + $0x48] sm:$0xff]  ;;  %v459_v40 = vld [vmem:[#allocation8 + $0x40] sm:$0xff] }
  0x40   : > { %436 = vmatpush.msra.mxu1 %v419_v15  ;;  %472 = vmatpush.msra.mxu2 %v465_v34  ;;  %v458_v41 = vld [vmem:[#allocation8 + $0x38] sm:$0xff]  ;;  %v457_v42 = vld [vmem:[#allocation8 + $0x30] sm:$0xff]  ;;  %v456_v43 = vld [vmem:[#allocation8 + $0x28] sm:$0xff]  ;;  %p901_p3 = pnand %p900_p1, %p1111_p4  ;;  %p906_p12 = por %p905_p11, %p904_p10 }
  0x41   : > { %396 = vmatpush.msra.mxu0 %v377_v12  ;;  %v455_v44 = vld [vmem:[#allocation8 + $0x20] sm:$0xff]  ;;  %v454_v45 = vld [vmem:[#allocation8 + $0x18] sm:$0xff]  ;;  %v756_v46 = vld [vmem:[%s1205_s2] ss:$0 sm:$0xff] }
  0x42   : > { %437 = vmatpush.msra.mxu1 %v418_v17  ;;  %473 = vmatpush.msra.mxu2 %v464_v35  ;;  %v453_v50 = vld [vmem:[#allocation8 + $0x10] sm:$0xff]  ;;  %v452_v51 = vld [vmem:[#allocation8 + $0x8] sm:$0xff]  ;;  %v451_v52 = vld [vmem:[#allocation8] sm:$0xff]  ;;  %p902_p9 = pneg %p901_p3 }
  0x43   : > { %397 = vmatpush.msra.mxu0 %v376_v14  ;;  %v757_v53 = vld [vmem:[%s1207_s4] ss:$0 sm:$0xff] }
  0x44   : > { %438 = vmatpush.msra.mxu1 %v417_v19  ;;  %474 = vmatpush.msra.mxu2 %v463_v36  ;;  %v758_v57 = vld [vmem:[%s1209_s6] ss:$0 sm:$0xff]  ;;  %p907_p13 = pnand %p906_p12, %p902_p9 }
  0x45   : > { %398 = vmatpush.msra.mxu0 %v375_v16 }
  0x46   : > { %439 = vmatpush.msra.mxu1 %v416_v21  ;;  %475 = vmatpush.msra.mxu2 %v462_v37 }
  0x47   : > { %399 = vmatpush.msra.mxu0 %v374_v18 }
  0x48   : > { %440 = vmatpush.msra.mxu1 %v415_v23  ;;  %476 = vmatpush.msra.mxu2 %v461_v38 }
  0x49   : > { %400 = vmatpush.msra.mxu0 %v373_v20 }
  0x4a   : > { %441 = vmatpush.msra.mxu1 %v414_v25  ;;  %477 = vmatpush.msra.mxu2 %v460_v39 }
  0x4b   : > { %401 = vmatpush.msra.mxu0 %v372_v22 }
  0x4c   : > { %442 = vmatpush.msra.mxu1 %v413_v27  ;;  %478 = vmatpush.msra.mxu2 %v459_v40 }
  0x4d   : > { %402 = vmatpush.msra.mxu0 %v371_v24 }
  0x4e   : > { %443 = vmatpush.msra.mxu1 %v412_v30  ;;  %479 = vmatpush.msra.mxu2 %v458_v41 }
  0x4f   : > { %403 = vmatpush.msra.mxu0 %v370_v26 }
  0x50   : > { %444 = vmatpush.msra.mxu1 %v411_v31  ;;  %480 = vmatpush.msra.mxu2 %v457_v42 }
  0x51   : > { %404 = vmatpush.msra.mxu0 %v369_v28 }
  0x52   : > { %405 = vmatmul.f32.vlgmr.msra.gmra.mxu0 %v368_v29  ;;  %445 = vmatpush.msra.mxu1 %v410_v32 }
  0x53   : > { %481 = vmatpush.msra.mxu2 %v456_v43 }
  0x55   : > { %482 = vmatpush.msra.mxu2 %v455_v44 }
  0x57   : > { %483 = vmatpush.msra.mxu2 %v454_v45 }
  0x59   : > { %484 = vmatpush.msra.mxu2 %v453_v50 }
  0x5b   : > { %485 = vmatpush.msra.mxu2 %v452_v51 }
  0x5d   : > { %486 = vmatpush.msra.mxu2 %v451_v52 }
  0xcf   : > { %v406_v47 = vpop.f32.mrf.mxu0 }
  0xd0   : > { %v407_v48 = vadd.f32 %v756_v46, %v406_v47 }
  0xd2   : > { %v409_v49 = vmax.f32 %v407_v48, 0.0 }
  0xd4   : > { %446 = vmatmul.f32.vlgmr.msra.gmra.mxu1 %v409_v49 }
 0x151   : > { %v447_v54 = vpop.f32.mrf.mxu1 }
 0x152   : > { %v448_v55 = vadd.f32 %v757_v53, %v447_v54 }
 0x154   : > { %v450_v56 = vmax.f32 %v448_v55, 0.0 }
 0x156   : > { %487 = vmatmul.f32.vlgmr.msra.gmra.mxu2 %v450_v56 }
 0x1d9   : > { %v488_v58 = vpop.f32.mrf.mxu2 }
 0x1da   : > { %v489_v59 = vadd.f32 %v758_v57, %v488_v58 }
 0x1dc   : > { %v655_v60 = vmul.f32 -1.442695, %v489_v59 }
 0x1de   : > { %759 = vpow2.f32 %v655_v60 }
 0x1e4   : > { %v760_v61 = vpop.eup %759 }
 0x1e5   : > { %v494_v62 = vadd.f32 1.0, %v760_v61 }
 0x1e7   : > { %761 = vrcp.f32 %v494_v62  ;;  %v506_v2 = vand.u32 2147483648, %v494_v62  ;;  %v504_v4 = vand.u32 2147483647, %v494_v62  ;;  %vm500_vm1 = vweird.f32 %v494_v62 }
 0x1e9   : > { %v507_v6 = vor.u32 1.1754944e-38, %v506_v2  ;;  %vm505_vm3 = vcmp.eq.f32.partialorder %v504_v4, 8.507059e+37 }
 0x1ed   : > { %v762_v63 = vpop.eup %761 }
 0x1ee   : > { %v496_v0 = vmul.f32 %v762_v63, %v494_v62  ;;  %vm501_vm0 = vweird.f32 %v762_v63 }
 0x1ef   : > { %vm502_vm2 = vmor %vm500_vm1, %vm501_vm0 }
 0x1f0   : > { %v497_v1 = vsub.f32 1.0, %v496_v0 }
 0x1f2   : > { %v498_v3 = vmul.f32 %v762_v63, %v497_v1 }
 0x1f4   : > { %v499_v5 = vadd.f32 %v762_v63, %v498_v3 }
 0x1f6   : > { %v503_v7 = vsel %vm502_vm2, %v762_v63, %v499_v5 }
 0x1f7   : > { %v508_v8 = vsel %vm505_vm3, %v507_v6, %v503_v7 }
 0x1f8   : > { %510 = vst [vmem:[%s366_s11] sm:$0xff] %v508_v8 }
 0x1f9   : > { %910 = shalt.err (!%p907_p13)
}
 0x1fa   : > { %675 = dma.vmem_to_hbm [thread:$0]  (%p1111_p4), %s526_s17, 128, %s528_s10, %s512_s27  }
 0x1fb PF: > { %s539_s5 = sand.u32 1, %s953_s24   ;;  %p692_p0 = pnand %p645_p6, %p1119_p7 }
 0x1fc   : > { %s540_s15 = scalar_lea.sflag [#allocation4], %s539_s5 }
 0x1fd   : > { %p693_p2 = pneg %p692_p0 }
 0x1ff   : > { %948 = dma.done.wait (%p693_p2), %s540_s15, 128  }
 0x200   : > { %950 = vsyncadd (%p693_p2), %s540_s15, 4294967168  ;;  %s25_s29 = sadd.s32 1, %s973_s29   ;;  %s1224_s24 = smov %s957_s25 }
 0x201   : > { %p22_p5 = scmp.ge.s32.totalorder %s25_s29, 4   ;;  %s1225_s25 = smov %s961_s26 }
 0x202   : > { %s1226_s26 = smov %s1117_s21  ;;  %s1227_s27 = smov %s969_s28 }
 0x203   : > { %s1228_s28 = smov %s1230_s14  ;;  %24 = sbr.rel (!%p22_p5) target bundleno = 12 (0xc), region = 105 }
 0x208   :  { %546 = vsyncpa [#allocation3], 1 }
 0x209   :  { %548 = vsyncpa [#allocation3 + $0x1], 1 }
 0x20a   :  { %549 = vsyncpa [#allocation6], 1 }
 0x20b   :  { %550 = vsyncpa [#allocation9], 1 }
 0x20c   :  { %551 = vsyncpa [#allocation4], 1 }
 0x20d   :  { %553 = vsyncpa [#allocation4 + $0x1], 1 }

</bundles_post_ra>
